<compile_context>
chip_gen: v5e
topology: v5e:2x2
jax: 0.10.0
libtpu: 0.0.40
codegen_flags: <defaults>
</compile_context>

<pallas_src>
import jax
import jax.numpy as jnp
from jax.experimental import pallas as pl
from jax.experimental.pallas import tpu as pltpu


def net_kernel(x_ref, w1_ref, b1_ref, w2_ref, b2_ref, w3_ref, b3_ref, out_ref):
    """Fused 3-layer MLP + sigmoid, feature-major (batch on lanes).

    x_ref   : (2K+1, TB) bf16  rows = [stu*ex (K); stu (K); kn_mean (1)]
    w1_ref  : (128, 2K+1) bf16 stacked W1 rows, transposed
    b1_ref  : (128, 1)   f32
    w2_ref  : (64, 128)  bf16  W2 transposed
    b2_ref  : (64, 1)    f32
    w3_ref  : (64, 1)    f32   W3 column
    b3_ref  : (1, 1)     f32   (SMEM scalar)
    out_ref : (1, TB)    f32   lane-dense sigmoid scores
    """
    # Layer 1: single MXU contraction (depth 2K+1 -- kn_mean folded in).
    h1 = jnp.dot(w1_ref[...], x_ref[...], preferred_element_type=jnp.float32)
    h1 = jnp.maximum(h1 + b1_ref[...], 0.0)                       # (128, TB)

    # Layer 2: MXU, bf16 operands, f32 accumulate.
    h2 = jnp.dot(w2_ref[...], h1.astype(jnp.bfloat16),
                 preferred_element_type=jnp.float32)
    h2 = jnp.maximum(h2 + b2_ref[...], 0.0)                       # (64, TB)

    # Layer 3 (output width 1): VPU multiply + sublane reduction, f32.
    logit = jnp.sum(h2 * w3_ref[...], axis=0, keepdims=True) + b3_ref[0, 0]
    out_ref[...] = jax.nn.sigmoid(logit)                          # (1, TB)


def _pick_tile(batch, tile_b_max):
    """Lane-dense batch tiles; keep >=2 grid steps for v7x megacore."""
    bp8 = ((batch + 7) // 8) * 8
    if bp8 <= 256:
        # Tiny batch: one tile covering the (sublane-padded) batch.
        return bp8, 1
    tile = min(tile_b_max, ((bp8 + 255) // 256) * 128)   # ~half the batch
    tile = max(128, (tile // 128) * 128)                 # multiple of 128 lanes
    return tile, pl.cdiv(batch, tile)


def make_params(key, student_n, exer_n, knowledge_n):
    ks = jax.random.split(key, 8)
    K = knowledge_n
    scale = 0.1
    return {
        "student_emb": scale * jax.random.normal(ks[0], (student_n, K), jnp.float32),
        "k_difficulty": scale * jax.random.normal(ks[1], (exer_n, K), jnp.float32),
        # Linear weights stored as (in, out): y = x @ W + b
        "w1": scale * jax.random.normal(ks[2], (3 * K, 128), jnp.float32),
        "b1": scale * jax.random.normal(ks[3], (1, 128), jnp.float32),
        "w2": scale * jax.random.normal(ks[4], (128, 64), jnp.float32),
        "b2": scale * jax.random.normal(ks[5], (1, 64), jnp.float32),
        "w3": scale * jax.random.normal(ks[6], (64, 1), jnp.float32),
        "b3": scale * jax.random.normal(ks[7], (1, 1), jnp.float32),
    }


def net_forward(params, stu_id, exer_id, kn_emb, *, tile_b=4096):
    # --- glue: embedding gathers + feature combine (fused by XLA) ---
    stu = params["student_emb"][stu_id].astype(jnp.float32)    # (B, K)
    ex = params["k_difficulty"][exer_id].astype(jnp.float32)   # (B, K)
    B, K = stu.shape

    kn_mean = jnp.mean(kn_emb.astype(jnp.float32), axis=1, keepdims=True)  # (B, 1)
    # Feature-major activations: batch along lanes (lane-dense in and out).
    feat = jnp.concatenate([stu * ex, stu, kn_mean], axis=1)   # (B, 2K+1)
    x_t = feat.T.astype(jnp.bfloat16)                          # (2K+1, B)

    # --- weight algebra (folded away under jit) ---
    w1 = params["w1"]                                          # (3K, 128)
    w1_kn = jnp.sum(w1[K:2 * K], axis=0, keepdims=True)        # (1, 128) rank-1 fold
    w1_t = jnp.concatenate([w1[0:K], w1[2 * K:3 * K], w1_kn],
                           axis=0).T.astype(jnp.bfloat16)      # (128, 2K+1)
    b1_c = params["b1"].T                                      # (128, 1) f32
    w2_t = params["w2"].T.astype(jnp.bfloat16)                 # (64, 128)
    b2_c = params["b2"].T                                      # (64, 1)  f32
    w3_c = params["w3"]                                        # (64, 1)  f32
    b3 = params["b3"]                                          # (1, 1)   f32 -> SMEM

    # --- batch tiling / padding ---
    tile_b, n_tiles = _pick_tile(B, tile_b)
    Bp = n_tiles * tile_b
    if Bp != B:
        x_t = jnp.pad(x_t, ((0, 0), (0, Bp - B)))

    feat_dim = 2 * K + 1

    def resident(shape):
        return pl.BlockSpec(shape, lambda i: (0, 0))

    out = pl.pallas_call(
        net_kernel,
        out_shape=jax.ShapeDtypeStruct((1, Bp), jnp.float32),
        grid=(n_tiles,),
        in_specs=[
            pl.BlockSpec((feat_dim, tile_b), lambda i: (0, i)),   # x (batch-tiled)
            resident((128, feat_dim)),                            # w1_t
            resident((128, 1)),                                   # b1
            resident((64, 128)),                                  # w2_t
            resident((64, 1)),                                    # b2
            resident((64, 1)),                                    # w3
            pl.BlockSpec(memory_space=pltpu.MemorySpace.SMEM),    # b3 scalar
        ],
        out_specs=pl.BlockSpec((1, tile_b), lambda i: (0, i)),    # lane-dense out
        compiler_params=pltpu.CompilerParams(
            dimension_semantics=("parallel",)),
    )(x_t, w1_t, b1_c, w2_t, b2_c, w3_c, b3)

    # output.squeeze() -> (B,)
    return out[0, :B]


def net_reference(params, stu_id, exer_id, kn_emb):
    """Pure-JAX f32 reference mirroring the PyTorch forward exactly."""
    stu = params["student_emb"][stu_id]
    ex = params["k_difficulty"][exer_id]
    K = stu.shape[1]
    kn_mean = jnp.mean(kn_emb.astype(jnp.float32), axis=1, keepdims=True)
    combined = jnp.concatenate(
        [stu * ex, jnp.broadcast_to(kn_mean, (stu.shape[0], K)), stu], axis=1)
    h1 = jnp.maximum(combined @ params["w1"] + params["b1"], 0.0)
    h2 = jnp.maximum(h1 @ params["w2"] + params["b2"], 0.0)
    return jax.nn.sigmoid(h2 @ params["w3"] + params["b3"])[:, 0]


if __name__ == "__main__":
    student_n, exer_n, knowledge_n = 20, 30, 32
    B = 8

    key = jax.random.PRNGKey(0)
    kp, k1, k2, k3 = jax.random.split(key, 4)
    params = make_params(kp, student_n, exer_n, knowledge_n)

    stu_id = jax.random.randint(k1, (B,), 0, student_n)
    exer_id = jax.random.randint(k2, (B,), 0, exer_n)
    kn_emb = (jax.random.uniform(k3, (B, knowledge_n)) < 0.25).astype(jnp.float32)

    out = jax.block_until_ready(net_forward(params, stu_id, exer_id, kn_emb))
    ref = jax.block_until_ready(net_reference(params, stu_id, exer_id, kn_emb))

    assert out.shape == (B,)
    # bf16 matmul operands with f32 accumulation -> relaxed tolerance vs f32 ref
    assert jnp.allclose(out, ref, atol=1e-2, rtol=0.0), (out, ref)
    print("KERNEL_OK")
</pallas_src>

<mosaic_0001>
module attributes {stable_mosaic.version = 11 : i64} {
  func.func @net_kernel(%arg0: i32, %arg1: memref<65x8xbf16, #tpu.memory_space<vmem>>, %arg2: memref<128x65xbf16, #tpu.memory_space<vmem>>, %arg3: memref<128x1xf32, #tpu.memory_space<vmem>>, %arg4: memref<64x128xbf16, #tpu.memory_space<vmem>>, %arg5: memref<64x1xf32, #tpu.memory_space<vmem>>, %arg6: memref<64x1xf32, #tpu.memory_space<vmem>>, %arg7: memref<1x1xf32, #tpu.memory_space<smem>>, %arg8: memref<1x8xf32, #tpu.memory_space<vmem>>) attributes {dimension_semantics = [#tpu.dimension_semantics<parallel>], iteration_bounds = array<i64: 1>, scalar_prefetch = 0 : i64, scratch_operands = 0 : i64, tpu.core_type = #tpu.core_type<tc>, window_params = [{transform_indices = @transform_0, window_bounds = array<i64: 65, 8>}, {pipeline_mode = #tpu.pipeline_mode<synchronous>, transform_indices = @transform_1, window_bounds = array<i64: 128, 65>}, {pipeline_mode = #tpu.pipeline_mode<synchronous>, transform_indices = @transform_2, window_bounds = array<i64: 128, 1>}, {pipeline_mode = #tpu.pipeline_mode<synchronous>, transform_indices = @transform_3, window_bounds = array<i64: 64, 128>}, {pipeline_mode = #tpu.pipeline_mode<synchronous>, transform_indices = @transform_4, window_bounds = array<i64: 64, 1>}, {pipeline_mode = #tpu.pipeline_mode<synchronous>, transform_indices = @transform_5, window_bounds = array<i64: 64, 1>}, {transform_indices = @transform_6, window_bounds = array<i64: 1, 1>}, {transform_indices = @transform_7, window_bounds = array<i64: 1, 8>}]} {
    %c0 = arith.constant 0 : index
    %c0_0 = arith.constant 0 : index
    %0 = vector.load %arg2[%c0, %c0_0] : memref<128x65xbf16, #tpu.memory_space<vmem>>, vector<128x65xbf16>
    %c0_1 = arith.constant 0 : index
    %c0_2 = arith.constant 0 : index
    %1 = vector.load %arg1[%c0_1, %c0_2] : memref<65x8xbf16, #tpu.memory_space<vmem>>, vector<65x8xbf16>
    %cst = arith.constant dense<0.000000e+00> : vector<128x8xf32>
    %2 = tpu.matmul %0, %1, %cst {dimension_numbers = #tpu.dot_dimension_numbers<[1], [0], [0], [1], [0, 0, 1, 1], [], []>} : vector<128x65xbf16>, vector<65x8xbf16>, vector<128x8xf32> -> vector<128x8xf32>
    %c0_3 = arith.constant 0 : index
    %c0_4 = arith.constant 0 : index
    %3 = vector.load %arg3[%c0_3, %c0_4] : memref<128x1xf32, #tpu.memory_space<vmem>>, vector<128x1xf32>
    %4 = vector.broadcast %3 : vector<128x1xf32> to vector<128x8xf32>
    %5 = arith.addf %2, %4 : vector<128x8xf32>
    %cst_5 = arith.constant 0.000000e+00 : f32
    %6 = vector.broadcast %cst_5 : f32 to vector<128x8xf32>
    %7 = arith.maximumf %5, %6 : vector<128x8xf32>
    %c0_6 = arith.constant 0 : index
    %c0_7 = arith.constant 0 : index
    %8 = vector.load %arg4[%c0_6, %c0_7] : memref<64x128xbf16, #tpu.memory_space<vmem>>, vector<64x128xbf16>
    %9 = arith.truncf %7 : vector<128x8xf32> to vector<128x8xbf16>
    %cst_8 = arith.constant dense<0.000000e+00> : vector<64x8xf32>
    %10 = tpu.matmul %8, %9, %cst_8 {dimension_numbers = #tpu.dot_dimension_numbers<[1], [0], [0], [1], [0, 0, 1, 1], [], []>} : vector<64x128xbf16>, vector<128x8xbf16>, vector<64x8xf32> -> vector<64x8xf32>
    %c0_9 = arith.constant 0 : index
    %c0_10 = arith.constant 0 : index
    %11 = vector.load %arg5[%c0_9, %c0_10] : memref<64x1xf32, #tpu.memory_space<vmem>>, vector<64x1xf32>
    %12 = vector.broadcast %11 : vector<64x1xf32> to vector<64x8xf32>
    %13 = arith.addf %10, %12 : vector<64x8xf32>
    %cst_11 = arith.constant 0.000000e+00 : f32
    %14 = vector.broadcast %cst_11 : f32 to vector<64x8xf32>
    %15 = arith.maximumf %13, %14 : vector<64x8xf32>
    %c0_12 = arith.constant 0 : index
    %c0_13 = arith.constant 0 : index
    %16 = vector.load %arg6[%c0_12, %c0_13] : memref<64x1xf32, #tpu.memory_space<vmem>>, vector<64x1xf32>
    %17 = vector.broadcast %16 : vector<64x1xf32> to vector<64x8xf32>
    %18 = arith.mulf %15, %17 : vector<64x8xf32>
    %cst_14 = arith.constant dense<0.000000e+00> : vector<8xf32>
    %19 = vector.multi_reduction <add>, %18, %cst_14 [0] : vector<64x8xf32> to vector<8xf32>
    %20 = vector.shape_cast %19 : vector<8xf32> to vector<1x8xf32>
    %c0_15 = arith.constant 0 : index
    %c0_16 = arith.constant 0 : index
    %21 = memref.load %arg7[%c0_15, %c0_16] : memref<1x1xf32, #tpu.memory_space<smem>>
    %22 = vector.broadcast %21 : f32 to vector<1x8xf32>
    %23 = arith.addf %20, %22 : vector<1x8xf32>
    %24 = arith.negf %23 : vector<1x8xf32>
    %25 = math.exp %24 : vector<1x8xf32>
    %cst_17 = arith.constant 1.000000e+00 : f32
    %26 = vector.broadcast %cst_17 : f32 to vector<1x8xf32>
    %27 = arith.addf %26, %25 : vector<1x8xf32>
    %28 = arith.divf %26, %27 : vector<1x8xf32>
    %c0_18 = arith.constant 0 : index
    %c0_19 = arith.constant 0 : index
    %29 = vector.load %arg8[%c0_18, %c0_19] : memref<1x8xf32, #tpu.memory_space<vmem>>, vector<1x8xf32>
    tpu.vector_store %arg8[%c0_18, %c0_19], %28 {strides = array<i32>} : memref<1x8xf32, #tpu.memory_space<vmem>>, vector<1x8xf32>,
    return
  }
  func.func @transform_0(%arg0: i32) -> (i32, i32) {
    %c0_i32 = arith.constant 0 : i32
    %c0_i32_0 = arith.constant 0 : i32
    return %c0_i32, %arg0 : i32, i32
  }
  func.func @transform_1(%arg0: i32) -> (i32, i32) {
    %c0_i32 = arith.constant 0 : i32
    %c0_i32_0 = arith.constant 0 : i32
    %c0_i32_1 = arith.constant 0 : i32
    return %c0_i32, %c0_i32_0 : i32, i32
  }
  func.func @transform_2(%arg0: i32) -> (i32, i32) {
    %c0_i32 = arith.constant 0 : i32
    %c0_i32_0 = arith.constant 0 : i32
    %c0_i32_1 = arith.constant 0 : i32
    return %c0_i32, %c0_i32_0 : i32, i32
  }
  func.func @transform_3(%arg0: i32) -> (i32, i32) {
    %c0_i32 = arith.constant 0 : i32
    %c0_i32_0 = arith.constant 0 : i32
    %c0_i32_1 = arith.constant 0 : i32
    return %c0_i32, %c0_i32_0 : i32, i32
  }
  func.func @transform_4(%arg0: i32) -> (i32, i32) {
    %c0_i32 = arith.constant 0 : i32
    %c0_i32_0 = arith.constant 0 : i32
    %c0_i32_1 = arith.constant 0 : i32
    return %c0_i32, %c0_i32_0 : i32, i32
  }
  func.func @transform_5(%arg0: i32) -> (i32, i32) {
    %c0_i32 = arith.constant 0 : i32
    %c0_i32_0 = arith.constant 0 : i32
    %c0_i32_1 = arith.constant 0 : i32
    return %c0_i32, %c0_i32_0 : i32, i32
  }
  func.func @transform_6(%arg0: i32) -> (i32, i32) {
    %c0_i32 = arith.constant 0 : i32
    %c0_i32_0 = arith.constant 0 : i32
    %c0_i32_1 = arith.constant 0 : i32
    return %c0_i32, %c0_i32_0 : i32, i32
  }
  func.func @transform_7(%arg0: i32) -> (i32, i32) {
    %c0_i32 = arith.constant 0 : i32
    %c0_i32_0 = arith.constant 0 : i32
    return %c0_i32, %arg0 : i32, i32
  }
}

</mosaic_0001>

<bundles_post_ra>
// kernel: tpu_custom_call.1
= control target key start
LH: loop header
LB: loop body
LE: loop exit
PB: predicated region body
PF: predicated region fallthrough
CT: control target
= control target key end

     0   :  { %vm242_vm0 = vcmask 1040384   ;;  %v698_v3 = vmov 0   ;;  %s915_s0 = inlined_call_operand.vmem [shape: bf16[65,8], index: 0, kind: input, shape index: {}]   ;;  %s916_s1 = inlined_call_operand.vmem [shape: bf16[128,65], index: 1, kind: input, shape index: {}]   ;;  %s917_s2 = inlined_call_operand.vmem [shape: f32[128,1], index: 2, kind: input, shape index: {}]   ;;  %s918_s3 = inlined_call_operand.vmem [shape: bf16[64,128], index: 3, kind: input, shape index: {}]   ;;  %s919_s4 = inlined_call_operand.vmem [shape: f32[64,1], index: 4, kind: input, shape index: {}]   ;;  %s920_s5 = inlined_call_operand.vmem [shape: f32[64,1], index: 5, kind: input, shape index: {}]   ;;  %s921_s6 = inlined_call_operand.<no memory space> [shape: f32[1,1], index: 6, kind: input, shape index: {}]   ;;  %s922_s7 = inlined_call_operand.hbm [shape: f32[1,8], index: 7, kind: output, shape index: {}]  }
   0x1   :  { %v68_v0 = vld [vmem:[%s917_s2 + $0x70] sm:$0xff]  ;;  %v53_v1 = vld [vmem:[%s915_s0 + $0x20] sm:$0x1]  ;;  %665 = vset.pattern.permute.xlu0 %v698_v3  ;;  %666 = vset.pattern.permute.xlu1 %v698_v3  ;;  %v244_v5 = vsel %vm242_vm0, 65535, %v698_v3 }
   0x2   :  { %v66_v2 = vld [vmem:[%s917_s2 + $0x60] sm:$0xff]  ;;  %v207_v4 = vunpack.c.l.b16 %v53_v1  ;;  %142 = vperm.xlu0 %665, %v68_v0   ;;  %667 = vset.pattern.permute.xlu2 %v698_v3 }
   0x3   :  { %132 = vperm.xlu1 %666, %v66_v2  }
   0x4   :  { %v212_v6 = vpack.c.b16 %v207_v4, %v207_v4 }
   0x6   :  { %v246_v7 = vand.u32 %v244_v5, %v212_v6 }
   0x7   :  { %13 = vsyncpa [#allocation4], 0  ;;  %v640_v8 = vld [vmem:[%s915_s0 + $0x18] sm:$0xff]  ;;  %v67_v10 = vld [vmem:[%s917_s2 + $0x68] sm:$0xff]  ;;  %vm217_vm1 = vcmask 531456   ;;  %vm494_vm2 = vcmask 64512  }
   0x8   :  { %646 = vmatpush.bf16.msra.mxu3 %v246_v7  ;;  %v69_v9 = vld [vmem:[%s917_s2 + $0x78] sm:$0xff]  ;;  %251 = vmatpush.bf16.msra.mxu0 %v246_v7  ;;  %v64_v11 = vld [vmem:[%s917_s2 + $0x50] sm:$0xff]  ;;  %v638_v13 = vld [vmem:[%s915_s0 + $0x8] sm:$0xff]  ;;  %s699_s23 = smov [#allocation3]   ;;  %vm538_vm6 = vcmask 57344  }
   0x9   :  { %645 = vmatpush.bf16.msra.mxu2 %v246_v7  ;;  %v639_v12 = vld [vmem:[%s915_s0 + $0x10] sm:$0xff]  ;;  %122 = vperm.xlu2 %667, %v64_v11   ;;  %v62_v14 = vld [vmem:[%s917_s2 + $0x40] sm:$0xff]  ;;  %v63_v15 = vld [vmem:[%s917_s2 + $0x48] sm:$0xff]  ;;  %s545_s24 = sshll.u32 %s699_s23, 4  ;;  %s546_s24 = int_to_ptr.vmem [resolvable:$true] %s545_s24 }
   0xa   :  { %147 = vperm.xlu0 %665, %v69_v9   ;;  %v65_v16 = vld [vmem:[%s917_s2 + $0x58] sm:$0xff]  ;;  %v637_v17 = vld [vmem:[%s915_s0] sm:$0xff]  ;;  %v60_v23 = vld [vmem:[%s917_s2 + $0x30] sm:$0xff] }
   0xb   :  { %137 = vperm.xlu1 %666, %v67_v10   ;;  %v633_v18 = vld [vmem:[%s916_s1 + $0x20] sm:$0xff]  ;;  %v61_v19 = vld [vmem:[%s917_s2 + $0x38] sm:$0xff]  ;;  %v56_v24 = vld [vmem:[%s917_s2 + $0x10] sm:$0xff] }
   0xc   :  { %648 = vmatpush.bf16.msra.mxu3 %v640_v8  ;;  %252 = vmatpush.bf16.msra.mxu0 %v640_v8  ;;  %v629_v20 = vld [vmem:[%s916_s1] sm:$0xff]  ;;  %v632_v22 = vld [vmem:[%s916_s1 + $0x18] sm:$0xff]  ;;  %v59_v26 = vld [vmem:[%s917_s2 + $0x28] sm:$0xff] }
   0xd   :  { %647 = vmatpush.bf16.msra.mxu2 %v640_v8  ;;  %v58_v21 = vld [vmem:[%s917_s2 + $0x20] sm:$0xff]  ;;  %v57_v25 = vld [vmem:[%s917_s2 + $0x18] sm:$0xff]  ;;  %v634_v27 = vld [vmem:[%s916_s1 + $0x28] sm:$0xff] }
   0xe   :  { %v55_v28 = vld [vmem:[%s917_s2 + $0x8] sm:$0xff]  ;;  %v329_v30 = vld [vmem:[%s919_s4] sm:$0xff]  ;;  %v331_v32 = vld [vmem:[%s919_s4 + $0x10] sm:$0xff] }
   0xf   :  { %v630_v29 = vld [vmem:[%s916_s1 + $0x8] sm:$0xff]  ;;  %v54_v31 = vld [vmem:[%s917_s2] sm:$0xff]  ;;  %v332_v33 = vld [vmem:[%s919_s4 + $0x18] sm:$0xff] }
  0x10   :  { %650 = vmatpush.bf16.msra.mxu3 %v639_v12  ;;  %253 = vmatpush.bf16.msra.mxu0 %v639_v12  ;;  %v330_v34 = vld [vmem:[%s919_s4 + $0x8] sm:$0xff]  ;;  %v635_v35 = vld [vmem:[%s916_s1 + $0x30] sm:$0xff]  ;;  %v333_v38 = vld [vmem:[%s919_s4 + $0x20] sm:$0xff] }
  0x11   :  { %649 = vmatpush.bf16.msra.mxu2 %v639_v12  ;;  %127 = vperm.xlu2 %667, %v65_v16   ;;  %v439_v36 = vld [vmem:[%s920_s5 + $0x8] sm:$0xff]  ;;  %v631_v37 = vld [vmem:[%s916_s1 + $0x10] sm:$0xff]  ;;  %v438_v39 = vld [vmem:[%s920_s5] sm:$0xff] }
  0x12   :  { %112 = vperm.xlu0 %665, %v62_v14   ;;  %v334_v40 = vld [vmem:[%s919_s4 + $0x28] sm:$0xff]  ;;  %v441_v41 = vld [vmem:[%s920_s5 + $0x18] sm:$0xff]  ;;  %v440_v42 = vld [vmem:[%s920_s5 + $0x10] sm:$0xff] }
  0x13   :  { %117 = vperm.xlu1 %666, %v63_v15   ;;  %v636_v43 = vld [vmem:[%s916_s1 + $0x38] sm:$0xff]  ;;  %v442_v44 = vld [vmem:[%s920_s5 + $0x20] sm:$0xff]  ;;  %v335_v46 = vld [vmem:[%s919_s4 + $0x30] sm:$0xff] }
  0x14   :  { %652 = vmatpush.bf16.msra.mxu3 %v638_v13  ;;  %254 = vmatpush.bf16.msra.mxu0 %v638_v13  ;;  %v336_v45 = vld [vmem:[%s919_s4 + $0x38] sm:$0xff]  ;;  %v444_v47 = vld [vmem:[%s920_s5 + $0x30] sm:$0xff]  ;;  %v443_v49 = vld [vmem:[%s920_s5 + $0x28] sm:$0xff] }
  0x15   :  { %651 = vmatpush.bf16.msra.mxu2 %v638_v13  ;;  %v445_v48 = vld [vmem:[%s920_s5 + $0x38] sm:$0xff] }
  0x18   :  { %654 = vmatpush.bf16.msra.mxu3 %v637_v17  ;;  %255 = vmatpush.bf16.msra.mxu0 %v637_v17 }
  0x19   :  { %653 = vmatpush.bf16.msra.mxu2 %v637_v17  ;;  %102 = vperm.xlu2 %667, %v60_v23  }
  0x1a   :  { %107 = vperm.xlu0 %665, %v61_v19  }
  0x1b   :  { %608 = vmatmul.msk.bf16.vlgmr.msra.gmra.mxu3 %vm217_vm1, %v633_v18  ;;  %92 = vperm.xlu1 %666, %v58_v21  }
  0x1c   :  { %604 = vmatmul.msk.bf16.vlgmr.msra.gmra.mxu0 %vm217_vm1, %v629_v20  ;;  %607 = vmatmul.msk.bf16.vlgmr.msra.gmra.mxu2 %vm217_vm1, %v632_v22 }
  0x21   :  { %97 = vperm.xlu2 %667, %v59_v26  }
  0x22   :  { %82 = vperm.xlu0 %665, %v56_v24  }
  0x23   :  { %87 = vperm.xlu1 %666, %v57_v25  }
  0x29   :  { %72 = vperm.xlu2 %667, %v54_v31  }
  0x2a   :  { %77 = vperm.xlu0 %665, %v55_v28  }
  0x2b   :  { %609 = vmatmul.msk.bf16.gmra.mxu3 %vm217_vm1, %v634_v27  ;;  %339 = vperm.xlu1 %666, %v329_v30  }
  0x2c   :  { %605 = vmatmul.msk.bf16.gmra.mxu0 %vm217_vm1, %v630_v29 }
  0x31   :  { %344 = vperm.xlu2 %667, %v330_v34  }
  0x32   :  { %349 = vperm.xlu0 %665, %v331_v32  }
  0x33   :  { %354 = vperm.xlu1 %666, %v332_v33  }
  0x39   :  { %448 = vperm.xlu2 %667, %v438_v39  }
  0x3a   :  { %453 = vperm.xlu0 %665, %v439_v36  }
  0x3b   :  { %610 = vmatmul.msk.bf16.gmra.mxu3 %vm217_vm1, %v635_v35  ;;  %359 = vperm.xlu1 %666, %v333_v38  }
  0x3c   :  { %606 = vmatmul.msk.bf16.gmra.mxu0 %vm217_vm1, %v631_v37 }
  0x41   :  { %458 = vperm.xlu2 %667, %v440_v42  }
  0x42   :  { %364 = vperm.xlu0 %665, %v334_v40  }
  0x43   :  { %463 = vperm.xlu1 %666, %v441_v41  }
  0x49   :  { %369 = vperm.xlu2 %667, %v335_v46  }
  0x4a   :  { %468 = vperm.xlu0 %665, %v442_v44  }
  0x4b   :  { %611 = vmatmul.msk.bf16.gmra.mxu3 %vm217_vm1, %v636_v43  ;;  %374 = vperm.xlu1 %666, %v336_v45  }
  0x51   :  { %473 = vperm.xlu2 %667, %v443_v49  }
  0x52   :  { %478 = vperm.xlu0 %665, %v444_v47  }
  0x53   :  { %483 = vperm.xlu1 %666, %v445_v48  }
  0x63   :  { %v123_v60 = vpop.permute.xlu2 %122 }
  0x6b   :  { %v128_v1 = vpop.permute.xlu2 %127 }
  0x73   :  { %v103_v10 = vpop.permute.xlu2 %102 }
  0x74   :  { %v143_v55 = vpop.permute.xlu0 %142 }
  0x75   :  { %v133_v58 = vpop.permute.xlu1 %132 }
  0x7b   :  { %v98_v29 = vpop.permute.xlu2 %97 }
  0x7c   :  { %v148_v59 = vpop.permute.xlu0 %147 }
  0x7d   :  { %v138_v63 = vpop.permute.xlu1 %137 }
  0x83   :  { %v73_v47 = vpop.permute.xlu2 %72 }
  0x84   :  { %v113_v2 = vpop.permute.xlu0 %112 }
  0x85   :  { %v118_v4 = vpop.permute.xlu1 %117 }
  0x8c   :  { %v108_v14 = vpop.permute.xlu0 %107 }
  0x8d   :  { %v93_v24 = vpop.permute.xlu1 %92 }
  0x94   :  { %v83_v33 = vpop.permute.xlu0 %82 }
  0x95   :  { %v88_v41 = vpop.permute.xlu1 %87 }
  0x99   :  { %v883_v53 = vpop.f32.mrf.mxu0 }
  0x9a   :  { %v258_v49 = vadd.f32 %v883_v53, %v73_v47  ;;  %v644_v53 = vld [vmem:[%s918_s3 + $0x18] sm:$0xff] }
  0x9c   :  { %v78_v48 = vpop.permute.xlu0 %77 }
  0x9e   :  { %v277_v50 = vpop.f32.mrf.mxu3 }
  0x9f   :  { %v272_v6 = vpop.f32.mrf.mxu2  ;;  %v278_v26 = vadd.f32 %v277_v50, %v113_v2 }
  0xa0   :  { %v273_v28 = vadd.f32 %v272_v6, %v103_v10 }
  0xa1   :  { %v885_v56 = vpop.f32.mrf.mxu0  ;;  %v305_v35 = vmax.f32 %v278_v26, 0.0 }
  0xa2   :  { %v303_v36 = vmax.f32 %v273_v28, 0.0  ;;  %v260_v50 = vadd.f32 %v885_v56, %v78_v48  ;;  %v642_v56 = vld [vmem:[%s918_s3 + $0x8] sm:$0xff] }
  0xa6   :  { %v279_v51 = vpop.f32.mrf.mxu3 }
  0xa7   :  { %v280_v21 = vadd.f32 %v279_v51, %v118_v4  ;;  %v274_v25 = vpop.f32.mrf.mxu2 }
  0xa8   :  { %v275_v31 = vadd.f32 %v274_v25, %v108_v14 }
  0xa9   :  { %v262_v61 = vpop.f32.mrf.mxu0  ;;  %v306_v30 = vmax.f32 %v280_v21, 0.0 }
  0xaa   :  { %v304_v38 = vmax.f32 %v275_v31, 0.0  ;;  %v263_v42 = vadd.f32 %v262_v61, %v83_v33  ;;  %v643_v61 = vld [vmem:[%s918_s3 + $0x10] sm:$0xff] }
  0xab   :  { %v325_v40 = vpack.c.bf16 %v306_v30, %v305_v35 }
  0xac   :  { %v324_v46 = vpack.c.bf16 %v304_v38, %v303_v36  ;;  %v299_v51 = vmax.f32 %v263_v42, 0.0 }
  0xae   :  { %v282_v52 = vpop.f32.mrf.mxu3 }
  0xaf   :  { %v283_v19 = vadd.f32 %v282_v52, %v123_v60  ;;  %v641_v60 = vld [vmem:[%s918_s3] sm:$0xff] }
  0xb1   :  { %v264_v3 = vpop.f32.mrf.mxu0  ;;  %v307_v27 = vmax.f32 %v283_v19, 0.0 }
  0xb2   :  { %v265_v43 = vadd.f32 %v264_v3, %v88_v41 }
  0xb4   :  { %v300_v52 = vmax.f32 %v265_v43, 0.0 }
  0xb6   :  { %v284_v54 = vpop.f32.mrf.mxu3 }
  0xb7   :  { %v285_v16 = vadd.f32 %v284_v54, %v128_v1  ;;  %v350_v1 = vpop.permute.xlu0 %349 }
  0xb9   :  { %v267_v15 = vpop.f32.mrf.mxu0  ;;  %v308_v22 = vmax.f32 %v285_v16, 0.0 }
  0xba   :  { %v268_v37 = vadd.f32 %v267_v15, %v93_v24 }
  0xbb   :  { %v326_v32 = vpack.c.bf16 %v308_v22, %v307_v27 }
  0xbc   :  { %v301_v44 = vmax.f32 %v268_v37, 0.0 }
  0xbe   :  { %v287_v57 = vpop.f32.mrf.mxu3 }
  0xbf   :  { %v288_v11 = vadd.f32 %v287_v57, %v133_v58  ;;  %v298_v57 = vmax.f32 %v260_v50, 0.0  ;;  %v322_v58 = vpack.c.bf16 %v300_v52, %v299_v51 }
  0xc1   :  { %v309_v20 = vmax.f32 %v288_v11, 0.0  ;;  %v269_v34 = vpop.f32.mrf.mxu0 }
  0xc2   :  { %v270_v39 = vadd.f32 %v269_v34, %v98_v29 }
  0xc4   :  { %v302_v45 = vmax.f32 %v270_v39, 0.0 }
  0xc6   :  { %v289_v62 = vpop.f32.mrf.mxu3  ;;  %v323_v54 = vpack.c.bf16 %v302_v45, %v301_v44 }
  0xc7   :  { %v290_v8 = vadd.f32 %v289_v62, %v138_v63  ;;  %v340_v62 = vpop.permute.xlu1 %339 }
  0xc9   :  { %v310_v17 = vmax.f32 %v290_v8, 0.0 }
  0xcb   :  { %v327_v23 = vpack.c.bf16 %v310_v17, %v309_v20 }
  0xce   :  { %v292_v0 = vpop.f32.mrf.mxu3 }
  0xcf   :  { %v293_v5 = vadd.f32 %v292_v0, %v143_v55  ;;  %v297_v55 = vmax.f32 %v258_v49, 0.0  ;;  %v345_v0 = vpop.permute.xlu2 %344  ;;  %v355_v2 = vpop.permute.xlu1 %354 }
  0xd1   :  { %v311_v12 = vmax.f32 %v293_v5, 0.0  ;;  %v454_v5 = vpop.permute.xlu0 %453 }
  0xd6   :  { %v294_v7 = vpop.f32.mrf.mxu3 }
  0xd7   :  { %v295_v9 = vadd.f32 %v294_v7, %v148_v59  ;;  %v321_v59 = vpack.c.bf16 %v298_v57, %v297_v55  ;;  %v449_v4 = vpop.permute.xlu2 %448  ;;  %v360_v6 = vpop.permute.xlu1 %359 }
  0xd9   :  { %v312_v13 = vmax.f32 %v295_v9, 0.0  ;;  %v365_v9 = vpop.permute.xlu0 %364 }
  0xdb   :  { %v328_v18 = vpack.c.bf16 %v312_v13, %v311_v12 }
  0xdd   :  { %401 = vmatpush.bf16.msra.mxu1 %v328_v18  ;;  %655 = vmatpush.bf16.msrb.mxu2 %v328_v18 }
  0xdf   :  { %v459_v8 = vpop.permute.xlu2 %458  ;;  %v464_v12 = vpop.permute.xlu1 %463 }
  0xe1   :  { %402 = vmatpush.bf16.msra.mxu1 %v327_v23  ;;  %656 = vmatpush.bf16.msrb.mxu2 %v327_v23  ;;  %v469_v24 = vpop.permute.xlu0 %468 }
  0xe5   :  { %403 = vmatpush.bf16.msra.mxu1 %v326_v32  ;;  %657 = vmatpush.bf16.msrb.mxu2 %v326_v32 }
  0xe7   :  { %v370_v25 = vpop.permute.xlu2 %369  ;;  %v375_v29 = vpop.permute.xlu1 %374 }
  0xe9   :  { %404 = vmatpush.bf16.msra.mxu1 %v325_v40  ;;  %658 = vmatpush.bf16.msrb.mxu2 %v325_v40  ;;  %v479_v47 = vpop.permute.xlu0 %478 }
  0xed   :  { %405 = vmatpush.bf16.msra.mxu1 %v324_v46  ;;  %659 = vmatpush.bf16.msrb.mxu2 %v324_v46 }
  0xef   :  { %v474_v48 = vpop.permute.xlu2 %473  ;;  %v484_v52 = vpop.permute.xlu1 %483 }
  0xf1   :  { %406 = vmatpush.bf16.msra.mxu1 %v323_v54  ;;  %660 = vmatpush.bf16.msrb.mxu2 %v323_v54 }
  0xf5   :  { %407 = vmatpush.bf16.msra.mxu1 %v322_v58  ;;  %661 = vmatpush.bf16.msrb.mxu2 %v322_v58 }
  0xf9   :  { %408 = vmatpush.bf16.msra.mxu1 %v321_v59  ;;  %662 = vmatpush.bf16.msrb.mxu2 %v321_v59 }
  0xfc   :  { %409 = vmatmul.bf16.vlgmr.msra.gmra.mxu1 %v641_v60  ;;  %424 = vmatmul.bf16.vlgmr.msrb.gmra.mxu2 %v644_v53 }
 0x10c   :  { %414 = vmatmul.bf16.gmra.mxu1 %v642_v56 }
 0x11c   :  { %419 = vmatmul.bf16.gmra.mxu1 %v643_v61 }
 0x179   :  { %v410_v63 = vpop.f32.mrf.mxu1 }
 0x17a   :  { %v411_v14 = vadd.f32 %v410_v63, %v340_v62 }
 0x17c   :  { %v430_v18 = vmax.f32 %v411_v14, 0.0 }
 0x17e   :  { %v486_v26 = vmul.f32 %v449_v4, %v430_v18 }
 0x17f   :  { %v425_v13 = vpop.f32.mrf.mxu2 }
 0x180   :  { %v426_v31 = vadd.f32 %v425_v13, %v370_v25  ;;  %v495_v34 = vsel %vm494_vm2, %v486_v26, 0.0 }
 0x181   :  { %v412_v3 = vpop.f32.mrf.mxu1 }
 0x182   :  { %v413_v11 = vadd.f32 %v412_v3, %v345_v0  ;;  %v436_v40 = vmax.f32 %v426_v31, 0.0 }
 0x184   :  { %v431_v16 = vmax.f32 %v413_v11, 0.0  ;;  %v492_v50 = vmul.f32 %v479_v47, %v436_v40 }
 0x186   :  { %v487_v21 = vmul.f32 %v454_v5, %v431_v16  ;;  %v506_v59 = vsel %vm494_vm2, %v492_v50, 0.0 }
 0x187   :  { %v427_v30 = vpop.f32.mrf.mxu2 }
 0x188   :  { %v496_v32 = vsel %vm494_vm2, %v487_v21, 0.0  ;;  %v428_v35 = vadd.f32 %v427_v30, %v375_v29 }
 0x189   :  { %v415_v7 = vpop.f32.mrf.mxu1  ;;  %v497_v38 = vadd.f32 %v496_v32, %v495_v34 }
 0x18a   :  { %v416_v15 = vadd.f32 %v415_v7, %v350_v1  ;;  %v437_v44 = vmax.f32 %v428_v35, 0.0 }
 0x18c   :  { %v432_v19 = vmax.f32 %v416_v15, 0.0  ;;  %v493_v55 = vmul.f32 %v484_v52, %v437_v44 }
 0x18e   :  { %v488_v27 = vmul.f32 %v459_v8, %v432_v19  ;;  %v508_v53 = vsel %vm494_vm2, %v493_v55, 0.0 }
 0x190   :  { %v498_v36 = vsel %vm494_vm2, %v488_v27, 0.0 }
 0x191   :  { %v417_v10 = vpop.f32.mrf.mxu1  ;;  %v499_v43 = vadd.f32 %v498_v36, %v497_v38 }
 0x192   :  { %v418_v17 = vadd.f32 %v417_v10, %v355_v2  ;;  %v517_v2 = vstv %s921_s6  ;;  %s547_s6 = sshll.u32 %s922_s7, 4  ;;  %s548_s6 = int_to_ptr.hbm [resolvable:$true] %s547_s6 }
 0x194   :  { %v433_v22 = vmax.f32 %v418_v17, 0.0 }
 0x196   :  { %v489_v33 = vmul.f32 %v464_v12, %v433_v22 }
 0x198   :  { %v500_v41 = vsel %vm494_vm2, %v489_v33, 0.0 }
 0x199   :  { %v420_v20 = vpop.f32.mrf.mxu1  ;;  %v501_v49 = vadd.f32 %v500_v41, %v499_v43 }
 0x19a   :  { %v421_v23 = vadd.f32 %v420_v20, %v360_v6 }
 0x19c   :  { %v434_v28 = vmax.f32 %v421_v23, 0.0 }
 0x19e   :  { %v490_v37 = vmul.f32 %v469_v24, %v434_v28 }
 0x1a0   :  { %v502_v45 = vsel %vm494_vm2, %v490_v37, 0.0 }
 0x1a1   :  { %v422_v39 = vpop.f32.mrf.mxu1  ;;  %v503_v54 = vadd.f32 %v502_v45, %v501_v49 }
 0x1a2   :  { %v423_v42 = vadd.f32 %v422_v39, %v365_v9 }
 0x1a4   :  { %v435_v46 = vmax.f32 %v423_v42, 0.0 }
 0x1a6   :  { %v491_v51 = vmul.f32 %v474_v48, %v435_v46 }
 0x1a8   :  { %v504_v57 = vsel %vm494_vm2, %v491_v51, 0.0 }
 0x1a9   :  { %v505_v58 = vadd.f32 %v504_v57, %v503_v54 }
 0x1ab   :  { %v507_v60 = vadd.f32 %v506_v59, %v505_v58 }
 0x1ad   :  { %v509_v56 = vadd.f32 %v508_v53, %v507_v60 }
 0x1af   :  { %v510_v61 = vrot.slane %v509_v56, 4 }
 0x1b1   :  { %v511_v62 = vadd.f32 %v510_v61, %v509_v56 }
 0x1b3   :  { %v512_v63 = vrot.slane %v511_v62, 2 }
 0x1b5   :  { %v513_v0 = vadd.f32 %v512_v63, %v511_v62 }
 0x1b7   :  { %v514_v1 = vrot.slane %v513_v0, 1 }
 0x1b9   :  { %v515_v3 = vadd.f32 %v514_v1, %v513_v0 }
 0x1bb   :  { %v518_v4 = vadd.f32 %v517_v2, %v515_v3 }
 0x1bd   :  { %v628_v5 = vmul.f32 -1.442695, %v518_v4 }
 0x1bf   :  { %668 = vpow2.f32 %v628_v5 }
 0x1c5   :  { %v669_v6 = vpop.eup %668 }
 0x1c6   :  { %v522_v7 = vadd.f32 1.0, %v669_v6 }
 0x1c8   :  { %670 = vrcp.f32 %v522_v7  ;;  %v534_v11 = vand.u32 2147483648, %v522_v7  ;;  %v532_v13 = vand.u32 2147483647, %v522_v7  ;;  %vm528_vm4 = vweird.f32 %v522_v7 }
 0x1ca   :  { %v535_v15 = vor.u32 1.1754944e-38, %v534_v11  ;;  %vm533_vm7 = vcmp.eq.f32.partialorder %v532_v13, 8.507059e+37 }
 0x1ce   :  { %v671_v8 = vpop.eup %670 }
 0x1cf   :  { %v524_v9 = vmul.f32 %v671_v8, %v522_v7  ;;  %vm529_vm3 = vweird.f32 %v671_v8 }
 0x1d0   :  { %vm530_vm5 = vmor %vm528_vm4, %vm529_vm3 }
 0x1d1   :  { %v525_v10 = vsub.f32 1.0, %v524_v9 }
 0x1d3   :  { %v526_v12 = vmul.f32 %v671_v8, %v525_v10 }
 0x1d5   :  { %v527_v14 = vadd.f32 %v671_v8, %v526_v12 }
 0x1d7   :  { %v531_v16 = vsel %vm530_vm5, %v671_v8, %v527_v14 }
 0x1d8   :  { %v536_v17 = vsel %vm533_vm7, %v535_v15, %v531_v16 }
 0x1d9   :  { %539 = vst.msk [vmem:[#allocation3] sm:$0x1] %vm538_vm6, %v536_v17 }
 0x1da   :  { %550 = dma.vmem_to_hbm [thread:$0]  %s546_s24, 16, %s548_s6, [#allocation4]  }
 0x1db   :  { %696 = dma.done.wait [#allocation4], 16  }
 0x1dc   :  { %697 = vsyncadd [#allocation4], 4294967280 }
 0x1dd   :  { %555 = vsyncpa [#allocation4], 1 }

</bundles_post_ra>
